<compile_context>
chip_gen: v7x
topology: tpu7x:2x2x1
jax: 0.10.0
libtpu: 0.0.40
codegen_flags: <defaults>
</compile_context>

<pallas_src>
import math

import jax
import jax.numpy as jnp
from jax import lax
from jax.experimental import pallas as pl
from jax.experimental.pallas import tpu as pltpu

# ---------------------------------------------------------------------------
# Model hyper-parameters (small, consistent with the module defaults scaled down)
# ---------------------------------------------------------------------------
BATCH = 2
SEQ_LEN = 8          # seq_len
INPUT_DIM = 6        # force-torque = 6 dof
D_MODEL = 32         # d_model
Z_DIM = 64           # output_dim
Z_PAD = 128          # lane-dense padded width
LN_EPS = 1e-5
NEG_INF = -1e30      # large finite negative (NaN-safe masking; diag always unmasked)

# Row offsets inside the packed constant buffer (each section 8-sublane aligned)
_WP_ROW = 0                              # (INPUT_DIM, D)   linear_proj weight
_PBIAS_ROW = 8                           # (B*T, D)         proj bias + pos-enc (tiled)
_WQKV_ROW = 24                           # (D, 3D)          fused qkv (gamma + 1/sqrt(D) folded)
_BQKV_ROW = 56                           # (1, 3D)          beta @ wqkv
_BE2_ROW = 57                            # (1, Z)           embed bias + bo @ sum_t we_t
_WE2_ROW = 64                            # (T*D, Z)         per-t blocks of wo @ we_t
_C_ROWS = _WE2_ROW + SEQ_LEN * D_MODEL   # 320 rows x 128 lanes x f32 = 160 KiB


# ---------------------------------------------------------------------------
# Pallas kernel: one invocation, whole batch fused in VMEM, two operands.
# ---------------------------------------------------------------------------
def _ft_encoder_kernel(x_ref, c_ref, o_ref):
    B, T, D = BATCH, SEQ_LEN, D_MODEL

    # ---- input projection; proj bias + positional encoding pre-folded -------
    wp = c_ref[_WP_ROW:_WP_ROW + INPUT_DIM, 0:D]                      # (F, D)
    pbias = c_ref[_PBIAS_ROW:_PBIAS_ROW + B * T, 0:D]                 # (B*T, D)
    h = jnp.dot(x_ref[...], wp, preferred_element_type=jnp.float32) + pbias

    # ---- LayerNorm (affine folded into the QKV weights at pack time) --------
    mean = jnp.mean(h, axis=-1, keepdims=True)
    var = jnp.mean((h - mean) ** 2, axis=-1, keepdims=True)
    hn = (h - mean) * lax.rsqrt(var + LN_EPS)                         # (B*T, D)

    # ---- fused QKV projection (gamma folded, q pre-scaled by 1/sqrt(D)) -----
    wqkv = c_ref[_WQKV_ROW:_WQKV_ROW + D, :]                          # (D, 128), cols 96:128 zero
    bqkv = c_ref[_BQKV_ROW:_BQKV_ROW + 1, :]                          # (1, 128)  = beta @ wqkv
    qkv = jnp.dot(hn, wqkv, preferred_element_type=jnp.float32) + bqkv  # (B*T, 128)

    # layout-preserving sublane split (no lane movement): (B*T,128) -> (B,T,128)
    qkv3 = qkv.reshape(B, T, Z_PAD)
    q = qkv3[:, :, 0:D]
    k = qkv3[:, :, D:2 * D]
    v = qkv3[:, :, 2 * D:3 * D]

    # ---- per-batch causal self-attention; mask built from iota (no DMA) -----
    att = jnp.einsum("bqd,bkd->bqk", q, k, preferred_element_type=jnp.float32)  # (B,T,T)
    row = lax.broadcasted_iota(jnp.int32, (B, T, T), 1)
    col = lax.broadcasted_iota(jnp.int32, (B, T, T), 2)
    att = jnp.where(col <= row, att, NEG_INF)        # causal; diagonal always unmasked
    att = att - jnp.max(att, axis=-1, keepdims=True)
    p = jnp.exp(att)
    p = p / jnp.sum(p, axis=-1, keepdims=True)       # exact divide for parity with reference
    # NOTE: attn_dropout / output_dropout are identity in eval mode.
    y = jnp.einsum("bqk,bkd->bqd", p, v, preferred_element_type=jnp.float32)    # (B,T,D)

    # ---- final embed: wo/bo folded into we2/be2; unrolled over T so the
    #      (B, T*D) sublane->lane relayout is never materialised --------------
    acc = jnp.zeros((B, Z_PAD), jnp.float32)
    for t in range(T):                               # static unroll, T = 8
        w_t = c_ref[_WE2_ROW + t * D:_WE2_ROW + (t + 1) * D, :]       # (D, 128)
        acc = acc + jnp.dot(y[:, t, :], w_t, preferred_element_type=jnp.float32)
    o_ref[...] = acc + c_ref[_BE2_ROW:_BE2_ROW + 1, :]


# ---------------------------------------------------------------------------
# One-time parameter packing: fold PE+bias, LN affine, 1/sqrt(D), wo/bo; pad
# everything into a single lane-dense constant buffer.
# ---------------------------------------------------------------------------
def pack_params(params, batch=BATCH):
    B, T, D, F, Z = batch, SEQ_LEN, D_MODEL, INPUT_DIM, Z_DIM
    assert _PBIAS_ROW + B * T <= _WQKV_ROW, "packed layout assumes B*T <= 16"

    # sinusoidal positional encoding (robomimic PositionalEncoding), folded
    # with the projection bias and tiled once per batch element.
    pos = jnp.arange(T, dtype=jnp.float32)[:, None]
    div = jnp.exp(jnp.arange(0, D, 2, dtype=jnp.float32) * (-math.log(10000.0) / D))
    pe = jnp.zeros((T, D), jnp.float32)
    pe = pe.at[:, 0::2].set(jnp.sin(pos * div))
    pe = pe.at[:, 1::2].set(jnp.cos(pos * div))
    pbias = jnp.tile(pe + params["bp"], (B, 1))                        # (B*T, D)

    # fused QKV: 1/sqrt(D) folded into q columns; LayerNorm affine folded in
    # (weight <- diag(gamma) @ W, bias <- beta @ W).
    wqkv = jnp.concatenate(
        [params["wq"] * (1.0 / math.sqrt(D)), params["wk"], params["wv"]], axis=1)  # (D, 3D)
    bqkv = params["beta"] @ wqkv                                       # (1, 3D)
    wqkv = params["gamma"].reshape(D, 1) * wqkv                        # (D, 3D)

    # attention out-projection folded into the final embed weight/bias.
    we3 = params["we"].reshape(T, D, Z)                                # per-t blocks we_t
    we2 = jnp.einsum("de,tez->tdz", params["wo"], we3)                 # wo @ we_t
    be2 = params["be"] + params["bo"] @ we3.sum(axis=0)                # (1, Z)

    C = jnp.zeros((_C_ROWS, Z_PAD), jnp.float32)
    C = C.at[_WP_ROW:_WP_ROW + F, 0:D].set(params["wp"])
    C = C.at[_PBIAS_ROW:_PBIAS_ROW + B * T, 0:D].set(pbias)
    C = C.at[_WQKV_ROW:_WQKV_ROW + D, 0:3 * D].set(wqkv)
    C = C.at[_BQKV_ROW, 0:3 * D].set(bqkv[0])
    C = C.at[_BE2_ROW, 0:Z].set(be2[0])
    C = C.at[_WE2_ROW:_WE2_ROW + T * D, 0:Z].set(we2.reshape(T * D, Z))
    return C


# ---------------------------------------------------------------------------
# Wrapper: one gridless pallas_call, two operand DMAs, lane-dense output.
# ---------------------------------------------------------------------------
@jax.jit
def ft_encoder_forward(x, consts):
    B, T, F = x.shape
    x2 = x.reshape(B * T, F)   # contiguous HBM reshape, free
    out = pl.pallas_call(
        _ft_encoder_kernel,
        out_shape=jax.ShapeDtypeStruct((B, Z_PAD), jnp.float32),
        in_specs=[pl.BlockSpec(memory_space=pltpu.MemorySpace.VMEM),
                  pl.BlockSpec(memory_space=pltpu.MemorySpace.VMEM)],
        out_specs=pl.BlockSpec(memory_space=pltpu.MemorySpace.VMEM),
    )(x2, consts)
    return out[:, :Z_DIM]


# ---------------------------------------------------------------------------
# Deterministic parameter construction (synthetic, no checkpoint)
# ---------------------------------------------------------------------------
def make_params(key):
    ks = jax.random.split(key, 11)
    s = 0.05
    return {
        # linear_proj: torch (out=D, in=F) -> stored transposed (F, D)
        "wp": jax.random.normal(ks[0], (INPUT_DIM, D_MODEL), jnp.float32) * s,
        "bp": jax.random.normal(ks[1], (1, D_MODEL), jnp.float32) * s,
        # LayerNorm affine (non-trivial so the fold is actually exercised)
        "gamma": 1.0 + s * jax.random.normal(ks[2], (1, D_MODEL), jnp.float32),
        "beta": s * jax.random.normal(ks[3], (1, D_MODEL), jnp.float32),
        # attn qkv (no bias): torch weight (3D, D) -> q/k/v slices transposed (D, D)
        "wq": jax.random.normal(ks[4], (D_MODEL, D_MODEL), jnp.float32) * s,
        "wk": jax.random.normal(ks[5], (D_MODEL, D_MODEL), jnp.float32) * s,
        "wv": jax.random.normal(ks[6], (D_MODEL, D_MODEL), jnp.float32) * s,
        # attn output projection
        "wo": jax.random.normal(ks[7], (D_MODEL, D_MODEL), jnp.float32) * s,
        "bo": jax.random.normal(ks[8], (1, D_MODEL), jnp.float32) * s,
        # final embed: torch weight (Z, T*D) -> transposed (T*D, Z)
        "we": jax.random.normal(ks[9], (SEQ_LEN * D_MODEL, Z_DIM), jnp.float32) * s,
        "be": jax.random.normal(ks[10], (1, Z_DIM), jnp.float32) * s,
    }


# Pure-JAX reference (mirrors the PyTorch forward), built from the ORIGINAL
# (unpacked) params so packing/folding bugs would be caught.
def ref_forward(x, p):
    B, T, F = x.shape
    D = D_MODEL
    h = x.reshape(B * T, F) @ p["wp"] + p["bp"]
    h = h.reshape(B, T, D)
    # positional encoding
    t = jnp.arange(T, dtype=jnp.float32)[None, :, None]
    div = jnp.exp(jnp.arange(0, D, 2, dtype=jnp.float32) * (-math.log(10000.0) / D))
    pe = jnp.zeros((1, T, D), jnp.float32)
    pe = pe.at[:, :, 0::2].set(jnp.sin(t * div))
    pe = pe.at[:, :, 1::2].set(jnp.cos(t * div))
    h = h + pe
    # layernorm
    mean = jnp.mean(h, axis=-1, keepdims=True)
    var = jnp.mean((h - mean) ** 2, axis=-1, keepdims=True)
    h = (h - mean) / jnp.sqrt(var + LN_EPS) * p["gamma"][0] + p["beta"][0]
    # causal self-attention (single head)
    q = h @ p["wq"]; k = h @ p["wk"]; v = h @ p["wv"]
    att = jnp.einsum("btd,bsd->bts", q, k) / math.sqrt(D)
    mask = jnp.tril(jnp.ones((T, T), bool))
    att = jnp.where(mask[None], att, -jnp.inf)
    att = jax.nn.softmax(att, axis=-1)
    y = jnp.einsum("bts,bsd->btd", att, v)
    y = y @ p["wo"] + p["bo"][0]
    # final embed
    return y.reshape(B, T * D) @ p["we"] + p["be"]


if __name__ == "__main__":
    key = jax.random.PRNGKey(0)
    kx, kp = jax.random.split(key)
    x = jax.random.normal(kx, (BATCH, SEQ_LEN, INPUT_DIM), jnp.float32)
    params = make_params(kp)
    consts = pack_params(params)

    out = jax.block_until_ready(ft_encoder_forward(x, consts))
    ref = ref_forward(x, params)

    assert out.shape == (BATCH, Z_DIM)
    # Tolerance covers default-precision (bf16-pass) matmul regrouping from the
    # algebraic weight folds; real packing/mask bugs give errors >> 1e-2.
    err = float(jnp.max(jnp.abs(out - ref)))
    assert jnp.allclose(out, ref, atol=3e-3, rtol=3e-3), f"max abs err {err}"

    print("KERNEL_OK")
</pallas_src>

<mosaic_0001>
module attributes {stable_mosaic.version = 11 : i64} {
  func.func @_ft_encoder_kernel(%arg0: memref<16x6xf32, #tpu.memory_space<vmem>>, %arg1: memref<320x128xf32, #tpu.memory_space<vmem>>, %arg2: memref<2x128xf32, #tpu.memory_space<vmem>>) attributes {dimension_semantics = [], scalar_prefetch = 0 : i64, scratch_operands = 0 : i64, tpu.core_type = #tpu.core_type<tc>} {
    %c0 = arith.constant 0 : index
    %c0_0 = arith.constant 0 : index
    %0 = vector.load %arg1[%c0, %c0_0] : memref<320x128xf32, #tpu.memory_space<vmem>>, vector<6x32xf32>
    %c8 = arith.constant 8 : index
    %c0_1 = arith.constant 0 : index
    %1 = vector.load %arg1[%c8, %c0_1] : memref<320x128xf32, #tpu.memory_space<vmem>>, vector<16x32xf32>
    %c0_2 = arith.constant 0 : index
    %c0_3 = arith.constant 0 : index
    %2 = vector.load %arg0[%c0_2, %c0_3] : memref<16x6xf32, #tpu.memory_space<vmem>>, vector<16x6xf32>
    %cst = arith.constant dense<0.000000e+00> : vector<16x32xf32>
    %3 = tpu.matmul %2, %0, %cst {dimension_numbers = #tpu.dot_dimension_numbers<[1], [0], [0], [1], [0, 0, 1, 1], [], []>} : vector<16x6xf32>, vector<6x32xf32>, vector<16x32xf32> -> vector<16x32xf32>
    %4 = arith.addf %3, %1 : vector<16x32xf32>
    %cst_4 = arith.constant dense<0.000000e+00> : vector<16xf32>
    %5 = vector.multi_reduction <add>, %4, %cst_4 [1] : vector<16x32xf32> to vector<16xf32>
    %6 = vector.shape_cast %5 : vector<16xf32> to vector<16x1xf32>
    %cst_5 = arith.constant 3.200000e+01 : f32
    %7 = vector.broadcast %cst_5 : f32 to vector<16x1xf32>
    %8 = arith.divf %6, %7 : vector<16x1xf32>
    %9 = vector.broadcast %8 : vector<16x1xf32> to vector<16x32xf32>
    %10 = arith.subf %4, %9 : vector<16x32xf32>
    %11 = arith.mulf %10, %10 : vector<16x32xf32>
    %cst_6 = arith.constant dense<0.000000e+00> : vector<16xf32>
    %12 = vector.multi_reduction <add>, %11, %cst_6 [1] : vector<16x32xf32> to vector<16xf32>
    %13 = vector.shape_cast %12 : vector<16xf32> to vector<16x1xf32>
    %cst_7 = arith.constant 3.200000e+01 : f32
    %14 = vector.broadcast %cst_7 : f32 to vector<16x1xf32>
    %15 = arith.divf %13, %14 : vector<16x1xf32>
    %16 = vector.broadcast %8 : vector<16x1xf32> to vector<16x32xf32>
    %17 = arith.subf %4, %16 : vector<16x32xf32>
    %cst_8 = arith.constant 9.99999974E-6 : f32
    %18 = vector.broadcast %cst_8 : f32 to vector<16x1xf32>
    %19 = arith.addf %15, %18 : vector<16x1xf32>
    %20 = math.rsqrt %19 : vector<16x1xf32>
    %21 = vector.broadcast %20 : vector<16x1xf32> to vector<16x32xf32>
    %22 = arith.mulf %17, %21 : vector<16x32xf32>
    %c24 = arith.constant 24 : index
    %c0_9 = arith.constant 0 : index
    %23 = vector.load %arg1[%c24, %c0_9] : memref<320x128xf32, #tpu.memory_space<vmem>>, vector<32x128xf32>
    %c56 = arith.constant 56 : index
    %c0_10 = arith.constant 0 : index
    %24 = vector.load %arg1[%c56, %c0_10] : memref<320x128xf32, #tpu.memory_space<vmem>>, vector<1x128xf32>
    %cst_11 = arith.constant dense<0.000000e+00> : vector<16x128xf32>
    %25 = tpu.matmul %22, %23, %cst_11 {dimension_numbers = #tpu.dot_dimension_numbers<[1], [0], [0], [1], [0, 0, 1, 1], [], []>} : vector<16x32xf32>, vector<32x128xf32>, vector<16x128xf32> -> vector<16x128xf32>
    %26 = vector.broadcast %24 : vector<1x128xf32> to vector<16x128xf32>
    %27 = arith.addf %25, %26 : vector<16x128xf32>
    %28 = vector.shape_cast %27 : vector<16x128xf32> to vector<2x8x128xf32>
    %29 = vector.extract_strided_slice %28 {offsets = [0, 0, 0], sizes = [2, 8, 32], strides = [1, 1, 1]} : vector<2x8x128xf32> to vector<2x8x32xf32>
    %30 = vector.extract_strided_slice %28 {offsets = [0, 0, 32], sizes = [2, 8, 32], strides = [1, 1, 1]} : vector<2x8x128xf32> to vector<2x8x32xf32>
    %31 = vector.extract_strided_slice %28 {offsets = [0, 0, 64], sizes = [2, 8, 32], strides = [1, 1, 1]} : vector<2x8x128xf32> to vector<2x8x32xf32>
    "tpu.trace_start"() <{level = 10 : i32, message = "bqd,bkd->bqk"}> : () -> ()
    %cst_12 = arith.constant dense<0.000000e+00> : vector<2x8x8xf32>
    %32 = tpu.matmul %29, %30, %cst_12 {dimension_numbers = #tpu.dot_dimension_numbers<[2], [2], [1], [1], [0, 0, 0, 1, 1, 1], [0], [0]>} : vector<2x8x32xf32>, vector<2x8x32xf32>, vector<2x8x8xf32> -> vector<2x8x8xf32>
    "tpu.trace_stop"() : () -> ()
    %33 = tpu.iota {dimensions = array<i32: 1>} : vector<2x8x8xi32>
    %34 = tpu.iota {dimensions = array<i32: 2>} : vector<2x8x8xi32>
    %35 = arith.cmpi sle, %34, %33 : vector<2x8x8xi32>
    %cst_13 = arith.constant -1.000000e+30 : f32
    %36 = vector.broadcast %cst_13 : f32 to vector<2x8x8xf32>
    %37 = arith.select %35, %32, %36 : vector<2x8x8xi1>, vector<2x8x8xf32>
    %cst_14 = arith.constant dense<0xFF800000> : vector<2x8xf32>
    %38 = vector.multi_reduction <maximumf>, %37, %cst_14 [2] : vector<2x8x8xf32> to vector<2x8xf32>
    %39 = vector.shape_cast %38 : vector<2x8xf32> to vector<2x8x1xf32>
    %40 = vector.broadcast %39 : vector<2x8x1xf32> to vector<2x8x8xf32>
    %41 = arith.subf %37, %40 : vector<2x8x8xf32>
    %42 = math.exp %41 : vector<2x8x8xf32>
    %cst_15 = arith.constant dense<0.000000e+00> : vector<2x8xf32>
    %43 = vector.multi_reduction <add>, %42, %cst_15 [2] : vector<2x8x8xf32> to vector<2x8xf32>
    %44 = vector.shape_cast %43 : vector<2x8xf32> to vector<2x8x1xf32>
    %45 = vector.broadcast %44 : vector<2x8x1xf32> to vector<2x8x8xf32>
    %46 = arith.divf %42, %45 : vector<2x8x8xf32>
    "tpu.trace_start"() <{level = 10 : i32, message = "bqk,bkd->bqd"}> : () -> ()
    %cst_16 = arith.constant dense<0.000000e+00> : vector<2x8x32xf32>
    %47 = tpu.matmul %46, %31, %cst_16 {dimension_numbers = #tpu.dot_dimension_numbers<[2], [1], [1], [2], [0, 0, 0, 1, 1, 2], [0], [0]>} : vector<2x8x8xf32>, vector<2x8x32xf32>, vector<2x8x32xf32> -> vector<2x8x32xf32>
    %cst_17 = arith.constant 0.000000e+00 : f32
    "tpu.trace_stop"() : () -> ()
    %48 = vector.broadcast %cst_17 : f32 to vector<2x128xf32>
    %c64 = arith.constant 64 : index
    %c0_18 = arith.constant 0 : index
    %49 = vector.load %arg1[%c64, %c0_18] : memref<320x128xf32, #tpu.memory_space<vmem>>, vector<32x128xf32>
    %50 = vector.extract_strided_slice %47 {offsets = [0, 0, 0], sizes = [2, 1, 32], strides = [1, 1, 1]} : vector<2x8x32xf32> to vector<2x1x32xf32>
    %51 = vector.shape_cast %50 : vector<2x1x32xf32> to vector<2x32xf32>
    %cst_19 = arith.constant dense<0.000000e+00> : vector<2x128xf32>
    %52 = tpu.matmul %51, %49, %cst_19 {dimension_numbers = #tpu.dot_dimension_numbers<[1], [0], [0], [1], [0, 0, 1, 1], [], []>} : vector<2x32xf32>, vector<32x128xf32>, vector<2x128xf32> -> vector<2x128xf32>
    %53 = arith.addf %48, %52 : vector<2x128xf32>
    %c96 = arith.constant 96 : index
    %c0_20 = arith.constant 0 : index
    %54 = vector.load %arg1[%c96, %c0_20] : memref<320x128xf32, #tpu.memory_space<vmem>>, vector<32x128xf32>
    %55 = vector.extract_strided_slice %47 {offsets = [0, 1, 0], sizes = [2, 1, 32], strides = [1, 1, 1]} : vector<2x8x32xf32> to vector<2x1x32xf32>
    %56 = vector.shape_cast %55 : vector<2x1x32xf32> to vector<2x32xf32>
    %cst_21 = arith.constant dense<0.000000e+00> : vector<2x128xf32>
    %57 = tpu.matmul %56, %54, %cst_21 {dimension_numbers = #tpu.dot_dimension_numbers<[1], [0], [0], [1], [0, 0, 1, 1], [], []>} : vector<2x32xf32>, vector<32x128xf32>, vector<2x128xf32> -> vector<2x128xf32>
    %58 = arith.addf %53, %57 : vector<2x128xf32>
    %c128 = arith.constant 128 : index
    %c0_22 = arith.constant 0 : index
    %59 = vector.load %arg1[%c128, %c0_22] : memref<320x128xf32, #tpu.memory_space<vmem>>, vector<32x128xf32>
    %60 = vector.extract_strided_slice %47 {offsets = [0, 2, 0], sizes = [2, 1, 32], strides = [1, 1, 1]} : vector<2x8x32xf32> to vector<2x1x32xf32>
    %61 = vector.shape_cast %60 : vector<2x1x32xf32> to vector<2x32xf32>
    %cst_23 = arith.constant dense<0.000000e+00> : vector<2x128xf32>
    %62 = tpu.matmul %61, %59, %cst_23 {dimension_numbers = #tpu.dot_dimension_numbers<[1], [0], [0], [1], [0, 0, 1, 1], [], []>} : vector<2x32xf32>, vector<32x128xf32>, vector<2x128xf32> -> vector<2x128xf32>
    %63 = arith.addf %58, %62 : vector<2x128xf32>
    %c160 = arith.constant 160 : index
    %c0_24 = arith.constant 0 : index
    %64 = vector.load %arg1[%c160, %c0_24] : memref<320x128xf32, #tpu.memory_space<vmem>>, vector<32x128xf32>
    %65 = vector.extract_strided_slice %47 {offsets = [0, 3, 0], sizes = [2, 1, 32], strides = [1, 1, 1]} : vector<2x8x32xf32> to vector<2x1x32xf32>
    %66 = vector.shape_cast %65 : vector<2x1x32xf32> to vector<2x32xf32>
    %cst_25 = arith.constant dense<0.000000e+00> : vector<2x128xf32>
    %67 = tpu.matmul %66, %64, %cst_25 {dimension_numbers = #tpu.dot_dimension_numbers<[1], [0], [0], [1], [0, 0, 1, 1], [], []>} : vector<2x32xf32>, vector<32x128xf32>, vector<2x128xf32> -> vector<2x128xf32>
    %68 = arith.addf %63, %67 : vector<2x128xf32>
    %c192 = arith.constant 192 : index
    %c0_26 = arith.constant 0 : index
    %69 = vector.load %arg1[%c192, %c0_26] : memref<320x128xf32, #tpu.memory_space<vmem>>, vector<32x128xf32>
    %70 = vector.extract_strided_slice %47 {offsets = [0, 4, 0], sizes = [2, 1, 32], strides = [1, 1, 1]} : vector<2x8x32xf32> to vector<2x1x32xf32>
    %71 = vector.shape_cast %70 : vector<2x1x32xf32> to vector<2x32xf32>
    %cst_27 = arith.constant dense<0.000000e+00> : vector<2x128xf32>
    %72 = tpu.matmul %71, %69, %cst_27 {dimension_numbers = #tpu.dot_dimension_numbers<[1], [0], [0], [1], [0, 0, 1, 1], [], []>} : vector<2x32xf32>, vector<32x128xf32>, vector<2x128xf32> -> vector<2x128xf32>
    %73 = arith.addf %68, %72 : vector<2x128xf32>
    %c224 = arith.constant 224 : index
    %c0_28 = arith.constant 0 : index
    %74 = vector.load %arg1[%c224, %c0_28] : memref<320x128xf32, #tpu.memory_space<vmem>>, vector<32x128xf32>
    %75 = vector.extract_strided_slice %47 {offsets = [0, 5, 0], sizes = [2, 1, 32], strides = [1, 1, 1]} : vector<2x8x32xf32> to vector<2x1x32xf32>
    %76 = vector.shape_cast %75 : vector<2x1x32xf32> to vector<2x32xf32>
    %cst_29 = arith.constant dense<0.000000e+00> : vector<2x128xf32>
    %77 = tpu.matmul %76, %74, %cst_29 {dimension_numbers = #tpu.dot_dimension_numbers<[1], [0], [0], [1], [0, 0, 1, 1], [], []>} : vector<2x32xf32>, vector<32x128xf32>, vector<2x128xf32> -> vector<2x128xf32>
    %78 = arith.addf %73, %77 : vector<2x128xf32>
    %c256 = arith.constant 256 : index
    %c0_30 = arith.constant 0 : index
    %79 = vector.load %arg1[%c256, %c0_30] : memref<320x128xf32, #tpu.memory_space<vmem>>, vector<32x128xf32>
    %80 = vector.extract_strided_slice %47 {offsets = [0, 6, 0], sizes = [2, 1, 32], strides = [1, 1, 1]} : vector<2x8x32xf32> to vector<2x1x32xf32>
    %81 = vector.shape_cast %80 : vector<2x1x32xf32> to vector<2x32xf32>
    %cst_31 = arith.constant dense<0.000000e+00> : vector<2x128xf32>
    %82 = tpu.matmul %81, %79, %cst_31 {dimension_numbers = #tpu.dot_dimension_numbers<[1], [0], [0], [1], [0, 0, 1, 1], [], []>} : vector<2x32xf32>, vector<32x128xf32>, vector<2x128xf32> -> vector<2x128xf32>
    %83 = arith.addf %78, %82 : vector<2x128xf32>
    %c288 = arith.constant 288 : index
    %c0_32 = arith.constant 0 : index
    %84 = vector.load %arg1[%c288, %c0_32] : memref<320x128xf32, #tpu.memory_space<vmem>>, vector<32x128xf32>
    %85 = vector.extract_strided_slice %47 {offsets = [0, 7, 0], sizes = [2, 1, 32], strides = [1, 1, 1]} : vector<2x8x32xf32> to vector<2x1x32xf32>
    %86 = vector.shape_cast %85 : vector<2x1x32xf32> to vector<2x32xf32>
    %cst_33 = arith.constant dense<0.000000e+00> : vector<2x128xf32>
    %87 = tpu.matmul %86, %84, %cst_33 {dimension_numbers = #tpu.dot_dimension_numbers<[1], [0], [0], [1], [0, 0, 1, 1], [], []>} : vector<2x32xf32>, vector<32x128xf32>, vector<2x128xf32> -> vector<2x128xf32>
    %88 = arith.addf %83, %87 : vector<2x128xf32>
    %c57 = arith.constant 57 : index
    %c0_34 = arith.constant 0 : index
    %89 = vector.load %arg1[%c57, %c0_34] : memref<320x128xf32, #tpu.memory_space<vmem>>, vector<1x128xf32>
    %90 = vector.broadcast %89 : vector<1x128xf32> to vector<2x128xf32>
    %91 = arith.addf %88, %90 : vector<2x128xf32>
    %c0_35 = arith.constant 0 : index
    %c0_36 = arith.constant 0 : index
    %92 = vector.load %arg2[%c0_35, %c0_36] : memref<2x128xf32, #tpu.memory_space<vmem>>, vector<2x128xf32>
    tpu.vector_store %arg2[%c0_35, %c0_36], %91 {strides = array<i32>} : memref<2x128xf32, #tpu.memory_space<vmem>>, vector<2x128xf32>,
    return
  }
}

</mosaic_0001>

<bundles_post_ra>
// kernel: ft_encoder_forward.1
= control target key start
LH: loop header
LB: loop body
LE: loop exit
PB: predicated region body
PF: predicated region fallthrough
CT: control target
= control target key end

     0   :  { %7 = vsyncpa [#allocation3], 0  ;;  %s1689_s0 = inlined_call_operand.vmem [shape: f32[16,6], index: 0, kind: input, shape index: {}]   ;;  %s1690_s1 = inlined_call_operand.hbm [shape: f32[320,128], index: 1, kind: input, shape index: {}]   ;;  %s1691_s2 = inlined_call_operand.hbm [shape: f32[2,128], index: 2, kind: output, shape index: {}]  }
   0x1   :  { %8 = vsyncpa [#allocation4], 0  ;;  %s1559_s9 = smov [#allocation2]   ;;  %s1511_s13 = scalar_lea.hbm %s1690_s1, 5120 }
   0x2   :  { %s16_s10 = sshll.u32 %s1559_s9, 4  ;;  %p1512_p0 = scmp.ne.s32.totalorder %s1690_s1, %s1511_s13  ;;  %s17_s10 = int_to_ptr.vmem [resolvable:$true] %s16_s10 }
   0x3   :  { %p1515_p1 = scmp.lt.u32.totalorder %s1511_s13, %s1690_s1 }
   0x5   :  { %p1517_p2 = pnand %p1515_p1, %p1512_p0 }
   0x7   :  { %1520 = shalt.err (!%p1517_p2)
}
   0x8   :  { %s1521_s18 = scalar_lea.vmem %s17_s10, 5120  ;;  %p1526_p4 = scmp.lt.s32.totalorder %s17_s10, %s17_s10 }
   0x9   :  { %p1522_p3 = scmp.ne.s32.totalorder %s17_s10, %s1521_s18  ;;  %p1527_p5 = scmp.lt.s32.totalorder %s1521_s18, %s1521_s18 }
   0xb   :  { %p1528_p6 = por %p1527_p5, %p1526_p4 }
   0xd   :  { %p1529_p7 = pnand %p1528_p6, %p1522_p3 }
   0xf   :  { %1532 = shalt.err (!%p1529_p7)
}
  0x10   :  { %s1560_s19 = smov 128   ;;  %s1561_s20 = smov 8  }
  0x11   :  { %22 = dma.hbm_to_vmem [thread:$0]  %s1690_s1, 5120, %s17_s10, [#allocation3], %s1560_s19, %s1560_s19, %s1561_s20  }
  0x12   :  { %1555 = dma.done.wait [#allocation3], 5120  }
  0x13   :  { %1556 = vsyncadd [#allocation3], 4294962176  ;;  %vm38_vm0 = vcmask 1045504   ;;  %vm31_vm1 = vcmask 48128   ;;  %v26_v0 = vld [vmem:[#allocation2] sm:$0x3f]  ;;  %v389_v45 = vlaneseq }
  0x14   :  { %v29_v1 = vld [vmem:[%s1689_s0] sm:$0xff]  ;;  %v30_v2 = vld [vmem:[%s1689_s0 + $0x8] sm:$0xff]  ;;  %1310 = vmatprep.subr.msk.mxu0 %vm38_vm0, %v26_v0  ;;  %v28_v5 = vld [vmem:[#allocation2 + $0x10] sm:$0xff]  ;;  %vm117_vm2 = vcmask 261120   ;;  %v1562_v37 = vmov 0.0   ;;  %vm1563_vm3 = vmmov 0  }
  0x15   :  { %1312 = vmatprep.mubr.msk.f32.mxu0 %vm31_vm1, %v29_v1  ;;  %1311 = vmatpush3.msk.msra.mxu0 %vm38_vm0, %v26_v0  ;;  %v27_v3 = vld [vmem:[#allocation2 + $0x8] sm:$0xff]  ;;  %v145_v21 = vld [vmem:[#allocation2 + $0x18] sm:$0xff]  ;;  %v146_v22 = vld [vmem:[#allocation2 + $0x20] sm:$0xff]  ;;  %s1564_s0 = smov 96   ;;  %v390_v46 = vshrl.u32 %v389_v45, 7  ;;  %v392_v47 = vand.u32 127, %v389_v45 }
  0x16   :  { %1313 = vmatmul.mubr.msk.f32.vlgmr.msra.gmra.mrb[0].mxu0 %vm31_vm1, %v30_v2  ;;  %v147_v23 = vld [vmem:[#allocation2 + $0x28] sm:$0xff]  ;;  %v1434_v24 = vpack.c.bf16 %v146_v22, %v145_v21  ;;  %v148_v25 = vld [vmem:[#allocation2 + $0x30] sm:$0xff]  ;;  %1326 = vmatprep.subr.mxu0 %v1562_v37  ;;  %v1235_v38 = vld [vmem:[#allocation2 + $0x38] ss:$0 sm:$0xff]  ;;  %vm396_vm5 = vcmask 64512   ;;  %s1565_s1 = smov 64  }
  0x17   :  { %v1438_v26 = vpack.c.bf16 %v148_v25, %v147_v23  ;;  %1328 = vmatprep.mubr.msk.f32.mxu0 %vm1563_vm3, %v1562_v37  ;;  %vm393_vm4 = vcmp.le.s32.totalorder %v392_v47, %v390_v46  ;;  %v574_v21 = vld [vmem:[#allocation2 + $0x58] sm:$0xff]  ;;  %v730_v23 = vld [vmem:[#allocation2 + $0x80] sm:$0xff]  ;;  %vm582_vm6 = vcmask 1041409   ;;  %v812_v47 = vld [vmem:[#allocation2 + $0xb0] sm:$0xff]  ;;  %s1567_s27 = smov [#allocation5]  }
  0x18   :  { %1435 = vmatprep.subr.bf16.mxu1 %v1434_v24  ;;  %v810_v25 = vld [vmem:[#allocation2 + $0xa0] sm:$0xff]  ;;  %s1223_s28 = sshll.u32 %s1567_s27, 4  ;;  %s1224_s28 = int_to_ptr.vmem [resolvable:$true] %s1223_s28 }
  0x19   :  { %1437 = vmatpush3.bf16.msra.mxu1 %v1434_v24  ;;  %v731_v24 = vld [vmem:[#allocation2 + $0x88] sm:$0xff]  ;;  %s1533_s29 = scalar_lea.vmem %s1224_s28, 32  ;;  %p1538_p9 = scmp.lt.s32.totalorder %s1224_s28, %s1224_s28 }
  0x1a   :  { %1439 = vmatprep.subr.bf16.mxu1 %v1438_v26  ;;  %p1534_p8 = scmp.ne.s32.totalorder %s1224_s28, %s1533_s29  ;;  %p1539_p10 = scmp.lt.s32.totalorder %s1533_s29, %s1533_s29 }
  0x1c   :  { %p1540_p11 = por %p1539_p10, %p1538_p9 }
  0x1d   :  { %1441 = vmatpush3.bf16.msra.mxu1 %v1438_v26 }
  0x1e   :  { %1336 = vmatprep.subr.mxu1 %v1562_v37  ;;  %p1541_p12 = pnand %p1540_p11, %p1534_p8 }
  0xe9   :  { %v1314_v4 = vpop.f32.mrb[0].mxu0 }
  0xea   :  { %v108_v6 = vpop.f32.mrb[1].mxu0  ;;  %v114_v8 = vadd.f32 %v1314_v4, %v28_v5  ;;  %v1566_v5 = vmov 0.0|0.0  }
  0xeb   :  { %v109_v7 = vadd.f32 %v108_v6, %v27_v3 }
  0xec   :  { %v121_v10 = vsel %vm117_vm2, %v114_v8, 0.0 }
  0xed   :  { %v118_v9 = vsel %vm117_vm2, %v109_v7, 0.0 }
  0xee   :  { %119 = vadd.xlane.f32.xlu0 %v118_v9 }
  0xf2   :  { %122 = vadd.xlane.f32.xlu0 %v121_v10 }
 0x17b   :  { %v120_v11 = vpop.xlane.xlu0 %119 }
 0x17c   :  { %v125_v12 = vmul.f32 0.03125, %v120_v11 }
 0x17e   :  { %v127_v13 = vsub.f32 %v109_v7, %v125_v12  ;;  %v575_v7 = vld [vmem:[#allocation2 + $0x60] sm:$0xff] }
 0x17f   :  { %v123_v14 = vpop.xlane.xlu0 %122 }
 0x180   :  { %v126_v15 = vmul.f32 0.03125, %v123_v14  ;;  %v129_v16 = vmul.f32 %v127_v13, %v127_v13  ;;  %v571_v14 = vld [vmem:[#allocation2 + $0x40] sm:$0xff] }
 0x182   :  { %v128_v17 = vsub.f32 %v114_v8, %v126_v15  ;;  %v131_v18 = vsel %vm117_vm2, %v129_v16, 0.0  ;;  %v576_v8 = vld [vmem:[#allocation2 + $0x68] sm:$0xff] }
 0x183   :  { %132 = vadd.xlane.f32.xlu1 %v131_v18  ;;  %v1443_v10 = vpack.c.bf16 %v576_v8, %v575_v7  ;;  %v572_v15 = vld [vmem:[#allocation2 + $0x48] sm:$0xff]  ;;  %v578_v18 = vld [vmem:[#allocation2 + $0x78] sm:$0xff]  ;;  %v972_v7 = vld [vmem:[#allocation2 + $0xf0] sm:$0xff] }
 0x184   :  { %v130_v19 = vmul.f32 %v128_v17, %v128_v17  ;;  %v1449_v16 = vpack.c.bf16 %v572_v15, %v571_v14  ;;  %v973_v8 = vld [vmem:[#allocation2 + $0xf8] sm:$0xff]  ;;  %v1131_v14 = vld [vmem:[#allocation2 + $0x128] sm:$0xff] }
 0x186   :  { %v134_v20 = vsel %vm117_vm2, %v130_v19, 0.0 }
 0x187   :  { %135 = vadd.xlane.f32.xlu1 %v134_v20  ;;  %v573_v20 = vld [vmem:[#allocation2 + $0x50] sm:$0xff] }
 0x188   :  { %v1452_v22 = vpack.c.bf16 %v574_v21, %v573_v20  ;;  %v1133_v20 = vld [vmem:[#allocation2 + $0x138] sm:$0xff] }
 0x210   :  { %v133_v27 = vpop.xlane.xlu1 %132 }
 0x211   :  { %v137_v28 = vmul.f32 0.03125, %v133_v27  ;;  %v811_v27 = vld [vmem:[#allocation2 + $0xa8] sm:$0xff] }
 0x213   :  { %v139_v29 = vadd.f32 1e-05, %v137_v28  ;;  %v732_v28 = vld [vmem:[#allocation2 + $0x90] sm:$0xff] }
 0x214   :  { %v136_v30 = vpop.xlane.xlu1 %135 }
 0x215   :  { %1499 = vrsqrt.f32 %v139_v29  ;;  %v138_v31 = vmul.f32 0.03125, %v136_v30  ;;  %v733_v29 = vld [vmem:[#allocation2 + $0x98] sm:$0xff] }
 0x217   :  { %v140_v32 = vadd.f32 1e-05, %v138_v31  ;;  %v1455_v31 = vpack.c.bf16 %v731_v24, %v730_v23 }
 0x219   :  { %1501 = vrsqrt.f32 %v140_v32 }
 0x21f   :  { %v1500_v33 = vpop.eup %1499 }
 0x220   :  { %v143_v34 = vmul.f32 %v1500_v33, %v127_v13  ;;  %v1461_v33 = vpack.c.bf16 %v811_v27, %v810_v25 }
 0x222   :  { %1323 = vmatprep.mubr.msk.f32.mxu1 %vm117_vm2, %v143_v34  ;;  %v1458_v34 = vpack.c.bf16 %v733_v29, %v732_v28 }
 0x223   :  { %v1502_v35 = vpop.eup %1501 }
 0x224   :  { %v144_v36 = vmul.f32 %v1502_v35, %v128_v17  ;;  %v577_v17 = vld [vmem:[#allocation2 + $0x70] sm:$0xff] }
 0x225   :  { %v1446_v19 = vpack.c.bf16 %v578_v18, %v577_v17  ;;  %v1053_v17 = vld [vmem:[#allocation2 + $0x118] sm:$0xff] }
 0x226   :  { %1324 = vmatmul.mubr.msk.f32.vlgmr.msra.gmra.mrb[0].mxu1 %vm117_vm2, %v144_v36 }
 0x227   :  { %1338 = vmatprep.mubr.msk.f32.mxu1 %vm1563_vm3, %v1562_v37 }
 0x2f9   :  { %v1325_v39 = vpop.f32.mrb[0].mxu1 }
 0x2fa   :  { %v232_v40 = vadd.f32 %v1325_v39, %v1235_v38  ;;  %v226_v41 = vpop.f32.mrb[1].mxu1 }
 0x2fb   :  { %v227_v42 = vadd.f32 %v1235_v38, %v226_v41 }
 0x2fc   :  { %313 = vrot.lane.b32.xlu1 %v232_v40, %s1564_s0 }
 0x2fd   :  { %236 = vrot.lane.b32.xlu0 %v227_v42, %s1564_s0 }
 0x36e   :  { %v314_v44 = vpop.permute.xlu1 %313 }
 0x36f   :  { %v237_v43 = vpop.permute.xlu0 %236 }
 0x370   :  { %1327 = vmatpush3.xpose.msk.msra.mxu0 %vm117_vm2, %v237_v43 }
 0x371   :  { %1331 = vmatprep.subr.mxu0 %v1562_v37 }
 0x373   :  { %1329 = vmatmul.mubr.msk.f32.vlgmr.msra.gmra.mrb[2].mxu0 %vm117_vm2, %v227_v42 }
 0x374   :  { %1332 = vmatpush3.xpose.msk.msra.mxu0 %vm117_vm2, %v314_v44  ;;  %1333 = vmatprep.mubr.msk.f32.mxu0 %vm1563_vm3, %v1562_v37 }
 0x375   :  { %1341 = vmatprep.subr.mxu0 %v1562_v37 }
 0x377   :  { %1334 = vmatmul.mubr.msk.f32.vlgmr.msra.gmra.mrb[4].mxu0 %vm117_vm2, %v232_v40 }
 0x378   :  { %1343 = vmatprep.mubr.msk.f32.mxu0 %vm1563_vm3, %v1562_v37 }
 0x446   :  { %v308_v48 = vpop.f32.mrb[2].mxu0 }
 0x447   :  { %v394_v49 = vsel %vm393_vm4, %v308_v48, -1e+30  ;;  %v1330_v50 = vpop.f32.mrb[3].mxu0  ;;  %v813_v48 = vld [vmem:[#allocation2 + $0xb8] sm:$0xff] }
 0x448   :  { %v397_v51 = vsel %vm396_vm5, %v394_v49, -inf }
 0x449   :  { %398 = vmax.xlane.f32.xlu1 %v397_v51 }
 0x44a   :  { %v385_v52 = vpop.f32.mrb[4].mxu0 }
 0x44b   :  { %v395_v53 = vsel %vm393_vm4, %v385_v52, -1e+30  ;;  %v1335_v54 = vpop.f32.mrb[5].mxu0 }
 0x44c   :  { %v400_v55 = vsel %vm396_vm5, %v395_v53, -inf }
 0x44d   :  { %401 = vmax.xlane.f32.xlu0 %v400_v55 }
 0x4d6   :  { %v399_v56 = vpop.xlane.xlu1 %398 }
 0x4d7   :  { %v403_v57 = vsub.f32 %v394_v49, %v399_v56 }
 0x4d9   :  { %v405_v58 = vmul.f32 1.442695, %v403_v57  ;;  %v890_v57 = vld [vmem:[#allocation2 + $0xc0] sm:$0xff] }
 0x4da   :  { %v402_v59 = vpop.xlane.xlu0 %401 }
 0x4db   :  { %1503 = vpow2.f32 %v405_v58  ;;  %v404_v60 = vsub.f32 %v395_v53, %v402_v59  ;;  %v891_v58 = vld [vmem:[#allocation2 + $0xc8] sm:$0xff] }
 0x4dd   :  { %v407_v61 = vmul.f32 1.442695, %v404_v60 }
 0x4df   :  { %1505 = vpow2.f32 %v407_v61 }
 0x4e5   :  { %v1504_v62 = vpop.eup %1503 }
 0x4e6   :  { %v409_v63 = vsel %vm396_vm5, %v1504_v62, 0.0 }
 0x4e7   :  { %410 = vadd.xlane.f32.xlu0 %v409_v63 }
 0x4e9   :  { %v1506_v0 = vpop.eup %1505 }
 0x4ea   :  { %v412_v1 = vsel %vm396_vm5, %v1506_v0, 0.0 }
 0x4eb   :  { %413 = vadd.xlane.f32.xlu1 %v412_v1  ;;  %v971_v1 = vld [vmem:[#allocation2 + $0xe8] sm:$0xff] }
 0x4fc   :  { %495 = vrot.lane.b32.xlu1 %v232_v40, %s1565_s1 }
 0x4fd   :  { %419 = vrot.lane.b32.xlu0 %v227_v42, %s1565_s1 }
 0x574   :  { %v411_v2 = vpop.xlane.xlu0 %410 }
 0x575   :  { %1507 = vrcp.f32 %v411_v2  ;;  %v1467_v2 = vpack.c.bf16 %v891_v58, %v890_v57 }
 0x578   :  { %v414_v3 = vpop.xlane.xlu1 %413  ;;  %v420_v4 = vpop.permute.xlu0 %419 }
 0x579   :  { %1509 = vrcp.f32 %v414_v3  ;;  %1337 = vmatpush3.msra.mxu1 %v420_v4  ;;  %v892_v3 = vld [vmem:[#allocation2 + $0xd0] sm:$0xff]  ;;  %v893_v4 = vld [vmem:[#allocation2 + $0xd8] sm:$0xff] }
 0x57a   :  { %1442 = vmatprep.subr.bf16.mxu1 %v1566_v5 }
 0x57c   :  { %v496_v6 = vpop.permute.xlu1 %495 }
 0x57d   :  { %1342 = vmatpush3.msra.mxu0 %v496_v6 }
 0x57e   :  { %1448 = vmatprep.subr.bf16.mxu0 %v1566_v5 }
 0x57f   :  { %v1508_v9 = vpop.eup %1507 }
 0x580   :  { %v416_v11 = vmul.f32 %v1508_v9, %v1504_v62  ;;  %v1464_v62 = vpack.c.bf16 %v813_v48, %v812_v47  ;;  %v1470_v9 = vpack.c.bf16 %v893_v4, %v892_v3 }
 0x582   :  { %1339 = vmatmul.mubr.msk.f32.vlgmr.msra.gmra.mrb[2].mxu1 %vm396_vm5, %v416_v11  ;;  %v1051_v11 = vld [vmem:[#allocation2 + $0x108] sm:$0xff] }
 0x583   :  { %v1510_v12 = vpop.eup %1509  ;;  %1444 = vmatpush3.bf16.msra.mxu1 %v1443_v10  ;;  %1354 = vmatprep.mubr.msk.f32.mxu1 %vm1563_vm3, %v1562_v37  ;;  %v1050_v10 = vld [vmem:[#allocation2 + $0x100] sm:$0xff] }
 0x584   :  { %v418_v13 = vmul.f32 %v1510_v12, %v1506_v0  ;;  %1445 = vmatprep.subr.bf16.mxu1 %v1566_v5  ;;  %v970_v0 = vld [vmem:[#allocation2 + $0xe0] sm:$0xff]  ;;  %v1476_v12 = vpack.c.bf16 %v973_v8, %v972_v7  ;;  %v1479_v15 = vpack.c.bf16 %v1051_v11, %v1050_v10 }
 0x585   :  { %v1473_v6 = vpack.c.bf16 %v971_v1, %v970_v0 }
 0x586   :  { %1344 = vmatmul.mubr.msk.f32.vlgmr.msra.gmra.mrb[6].mxu0 %vm396_vm5, %v418_v13  ;;  %v1130_v13 = vld [vmem:[#allocation2 + $0x120] sm:$0xff] }
 0x587   :  { %1365 = vmatprep.mubr.msk.f32.mxu0 %vm1563_vm3, %v1562_v37  ;;  %1450 = vmatpush3.bf16.msra.mxu0 %v1449_v16  ;;  %v1052_v16 = vld [vmem:[#allocation2 + $0x110] sm:$0xff]  ;;  %v1485_v18 = vpack.c.bf16 %v1131_v14, %v1130_v13 }
 0x588   :  { %1451 = vmatprep.subr.bf16.mxu0 %v1566_v5  ;;  %1447 = vmatpush3.bf16.msra.mxu1 %v1446_v19  ;;  %v1132_v19 = vld [vmem:[#allocation2 + $0x130] sm:$0xff]  ;;  %v1482_v21 = vpack.c.bf16 %v1053_v17, %v1052_v16 }
 0x589   :  { %1454 = vmatprep.subr.bf16.mxu1 %v1566_v5 }
 0x58b   :  { %1453 = vmatpush3.bf16.msra.mxu0 %v1452_v22  ;;  %v1488_v22 = vpack.c.bf16 %v1133_v20, %v1132_v19 }
 0x58c   :  { %1460 = vmatprep.subr.bf16.mxu0 %v1566_v5 }
 0x655   :  { %v491_v26 = vpop.f32.mrb[2].mxu1 }
 0x656   :  { %v1340_v30 = vpop.f32.mrb[3].mxu1  ;;  %v581_v32 = vrot.slane %v491_v26, 1  ;;  %v734_v35 = vrot.slane %v491_v26, 2  ;;  %v814_v38 = vrot.slane %v491_v26, 3  ;;  %v894_v39 = vrot.slane %v491_v26, 4 }
 0x657   :  { %v974_v40 = vrot.slane %v491_v26, 5  ;;  %v1054_v41 = vrot.slane %v491_v26, 6  ;;  %v1134_v56 = vrot.slane %v491_v26, 7 }
 0x659   :  { %v567_v36 = vpop.f32.mrb[6].mxu0 }
 0x65a   :  { %v1345_v42 = vpop.f32.mrb[7].mxu0  ;;  %v583_v43 = vsel %vm582_vm6, %v567_v36, %v581_v32  ;;  %v656_v44 = vrot.slane %v567_v36, 7  ;;  %v735_v45 = vrot.slane %v567_v36, 1  ;;  %v815_v46 = vrot.slane %v567_v36, 2 }
 0x65b   :  { %1355 = vmatmul.mubr.msk.f32.vlgmr.msra.gmra.mrb[4].mxu1 %vm117_vm2, %v583_v43  ;;  %v895_v49 = vrot.slane %v567_v36, 3  ;;  %v975_v50 = vrot.slane %v567_v36, 4  ;;  %v1055_v51 = vrot.slane %v567_v36, 5  ;;  %v1135_v52 = vrot.slane %v567_v36, 6  ;;  %v1252_v43 = vld [vmem:[#allocation2 + $0x39] ss:$0 sm:$0xff] }
 0x65c   :  { %1456 = vmatpush3.bf16.msra.mxu1 %v1455_v31  ;;  %v657_v53 = vsel %vm582_vm6, %v656_v44, %v491_v26  ;;  %1376 = vmatprep.mubr.msk.f32.mxu1 %vm1563_vm3, %v1562_v37  ;;  %v736_v54 = vsel %vm582_vm6, %v735_v45, %v734_v35  ;;  %v816_v55 = vsel %vm582_vm6, %v815_v46, %v814_v38 }
 0x65d   :  { %1366 = vmatmul.mubr.msk.f32.vlgmr.msra.gmra.mrb[8].mxu0 %vm117_vm2, %v657_v53  ;;  %1457 = vmatprep.subr.bf16.mxu1 %v1566_v5  ;;  %v896_v59 = vsel %vm582_vm6, %v895_v49, %v894_v39  ;;  %v976_v60 = vsel %vm582_vm6, %v975_v50, %v974_v40  ;;  %v1056_v61 = vsel %vm582_vm6, %v1055_v51, %v1054_v41 }
 0x65e   :  { %1462 = vmatpush3.bf16.msra.mxu0 %v1461_v33  ;;  %1387 = vmatprep.mubr.msk.f32.mxu0 %vm1563_vm3, %v1562_v37  ;;  %v1136_v63 = vsel %vm582_vm6, %v1135_v52, %v1134_v56 }
 0x65f   :  { %1463 = vmatprep.subr.bf16.mxu0 %v1566_v5 }
 0x660   :  { %1459 = vmatpush3.bf16.msra.mxu1 %v1458_v34 }
 0x661   :  { %1466 = vmatprep.subr.bf16.mxu1 %v1566_v5 }
 0x662   :  { %1465 = vmatpush3.bf16.msra.mxu0 %v1464_v62 }
 0x663   :  { %1377 = vmatmul.mubr.msk.f32.vlgmr.msra.gmra.mrb[6].mxu1 %vm117_vm2, %v736_v54  ;;  %1472 = vmatprep.subr.bf16.mxu0 %v1566_v5 }
 0x664   :  { %1468 = vmatpush3.bf16.msra.mxu1 %v1467_v2  ;;  %1398 = vmatprep.mubr.msk.f32.mxu1 %vm1563_vm3, %v1562_v37 }
 0x665   :  { %1388 = vmatmul.mubr.msk.f32.vlgmr.msra.gmra.mrb[10].mxu0 %vm117_vm2, %v816_v55  ;;  %1469 = vmatprep.subr.bf16.mxu1 %v1566_v5 }
 0x666   :  { %1474 = vmatpush3.bf16.msra.mxu0 %v1473_v6  ;;  %1409 = vmatprep.mubr.msk.f32.mxu0 %vm1563_vm3, %v1562_v37 }
 0x667   :  { %1475 = vmatprep.subr.bf16.mxu0 %v1566_v5 }
 0x668   :  { %1471 = vmatpush3.bf16.msra.mxu1 %v1470_v9 }
 0x669   :  { %1478 = vmatprep.subr.bf16.mxu1 %v1566_v5 }
 0x66a   :  { %1477 = vmatpush3.bf16.msra.mxu0 %v1476_v12 }
 0x66b   :  { %1399 = vmatmul.mubr.msk.f32.vlgmr.msra.gmra.mrb[8].mxu1 %vm117_vm2, %v896_v59  ;;  %1484 = vmatprep.subr.bf16.mxu0 %v1566_v5 }
 0x66c   :  { %1480 = vmatpush3.bf16.msra.mxu1 %v1479_v15  ;;  %1420 = vmatprep.mubr.msk.f32.mxu1 %vm1563_vm3, %v1562_v37 }
 0x66d   :  { %1410 = vmatmul.mubr.msk.f32.vlgmr.msra.gmra.mrb[12].mxu0 %vm117_vm2, %v976_v60  ;;  %1481 = vmatprep.subr.bf16.mxu1 %v1566_v5 }
 0x66e   :  { %1486 = vmatpush3.bf16.msra.mxu0 %v1485_v18  ;;  %1431 = vmatprep.mubr.msk.f32.mxu0 %vm1563_vm3, %v1562_v37 }
 0x66f   :  { %1487 = vmatprep.subr.bf16.mxu0 %v1566_v5 }
 0x670   :  { %1483 = vmatpush3.bf16.msra.mxu1 %v1482_v21 }
 0x672   :  { %1489 = vmatpush3.bf16.msra.mxu0 %v1488_v22 }
 0x673   :  { %1421 = vmatmul.mubr.msk.f32.vlgmr.msra.gmra.mrb[10].mxu1 %vm117_vm2, %v1056_v61 }
 0x675   :  { %1432 = vmatmul.mubr.msk.f32.vlgmr.msra.gmra.mrb[14].mxu0 %vm117_vm2, %v1136_v63 }
 0x72e   :  { %v652_v23 = vpop.f32.mrb[4].mxu1 }
 0x72f   :  { %v1356_v24 = vpop.f32.mrb[5].mxu1 }
 0x730   :  { %v726_v25 = vpop.f32.mrb[8].mxu0 }
 0x731   :  { %v727_v26 = vadd.f32 %v726_v25, %v652_v23  ;;  %v1367_v27 = vpop.f32.mrb[9].mxu0 }
 0x736   :  { %v805_v28 = vpop.f32.mrb[6].mxu1 }
 0x737   :  { %v809_v29 = vadd.f32 %v805_v28, %v727_v26  ;;  %v1378_v30 = vpop.f32.mrb[7].mxu1 }
 0x738   :  { %v885_v31 = vpop.f32.mrb[10].mxu0 }
 0x739   :  { %v889_v32 = vadd.f32 %v885_v31, %v809_v29  ;;  %v1389_v33 = vpop.f32.mrb[11].mxu0 }
 0x73e   :  { %v965_v37 = vpop.f32.mrb[8].mxu1 }
 0x73f   :  { %v969_v34 = vadd.f32 %v965_v37, %v889_v32  ;;  %v1400_v5 = vpop.f32.mrb[9].mxu1 }
 0x740   :  { %v1045_v35 = vpop.f32.mrb[12].mxu0 }
 0x741   :  { %v1049_v36 = vadd.f32 %v1045_v35, %v969_v34  ;;  %v1411_v38 = vpop.f32.mrb[13].mxu0 }
 0x746   :  { %v1125_v39 = vpop.f32.mrb[10].mxu1 }
 0x747   :  { %v1129_v40 = vadd.f32 %v1125_v39, %v1049_v36  ;;  %v1422_v41 = vpop.f32.mrb[11].mxu1 }
 0x748   :  { %v1205_v42 = vpop.f32.mrb[14].mxu0 }
 0x749   :  { %v1209_v44 = vadd.f32 %v1205_v42, %v1129_v40  ;;  %v1433_v45 = vpop.f32.mrb[15].mxu0 }
 0x74b   :  { %v1215_v46 = vadd.f32 %v1252_v43, %v1209_v44 }
 0x74d   :  { %1216 = vst [vmem:[#allocation5] sm:$0x3] %v1215_v46 }
 0x74e   :  { %1544 = shalt.err (!%p1541_p12)
}
 0x74f   :  { %s1545_s4 = scalar_lea.hbm %s1691_s2, 32 }
 0x750   :  { %p1546_p13 = scmp.ne.s32.totalorder %s1691_s2, %s1545_s4  ;;  %p1549_p0 = scmp.lt.u32.totalorder %s1545_s4, %s1691_s2 }
 0x752   :  { %p1551_p1 = pnand %p1549_p0, %p1546_p13 }
 0x754   :  { %1554 = shalt.err (!%p1551_p1)
}
 0x755   :  { %1226 = dma.vmem_to_hbm [thread:$0]  %s1224_s28, 32, %s1691_s2, [#allocation4]  }
 0x756   :  { %1557 = dma.done.wait [#allocation4], 32  }
 0x757   :  { %1558 = vsyncadd [#allocation4], 4294967264 }
 0x758   :  { %1230 = vsyncpa [#allocation3], 1 }
 0x759   :  { %1231 = vsyncpa [#allocation4], 1 }

</bundles_post_ra>
